<compile_context>
chip_gen: v7x
topology: tpu7x:2x2x1
jax: 0.10.0
libtpu: 0.0.40
codegen_flags: <defaults>
</compile_context>

<pallas_src>
import jax
import jax.numpy as jnp
from jax import lax
from jax.experimental import pallas as pl
from jax.experimental.pallas import tpu as pltpu


def _round_up(x, m):
    return (x + m - 1) // m * m


def _make_tcn_kernel(K, dil, Cin_p, Cout_p, Tt, halo_pad, compute_dtype):
    h2 = (K - 1) * dil          # history needed by conv2
    W = halo_pad + Tt           # width of the DMA'd input window
    W1 = Tt + h2                # conv1 is evaluated on an h2-extended range

    def kernel(x_hbm, w1_ref, b1_ref, w2_ref, b2_ref, wd_ref, bd_ref,
               o_ref, xbuf, out1_buf, dma_sem):
        b = pl.program_id(0)
        t = pl.program_id(1)
        nT = pl.num_programs(1)
        # Scalar index math before any DMA wait (keeps SMEM forwarding).
        slot = t % 2
        tstart = pl.multiple_of(t * Tt, 128)

        def window_copy(bi, ti, si):
            ts = pl.multiple_of(ti * Tt, 128)
            return pltpu.make_async_copy(
                x_hbm.at[bi, :, pl.ds(ts, W)], xbuf.at[si], dma_sem.at[si])

        # Prime at the first time tile of every batch: no cross-batch DMA
        # state, so this stays correct when the parallel batch axis is
        # sharded across TensorCores (v7x).
        @pl.when(t == 0)
        def _():
            window_copy(b, t, slot).start()

        # Prefetch the next time tile of this batch into the other slot so
        # the halo-window DMA overlaps this step's compute (P4).
        @pl.when(t + 1 < nT)
        def _():
            window_copy(b, t + 1, 1 - slot).start()

        # Wait only on the slot we are about to consume.
        window_copy(b, t, slot).wait()

        xw = xbuf.at[slot]                                 # ref view, no load

        # ---- conv1: K dilated taps fused into one deep MXU matmul --------
        # Output column c of out1 corresponds to original time tstart-h2+c;
        # tap j reads x at window column (halo_pad - h2 - (K-1-j)*dil) + c.
        x1 = jnp.concatenate(
            [xw[:, halo_pad - h2 - (K - 1 - j) * dil:
                   halo_pad - h2 - (K - 1 - j) * dil + W1] for j in range(K)],
            axis=0)                                        # (K*Cin_p, W1)
        out1 = jnp.dot(w1_ref[...], x1,
                       preferred_element_type=jnp.float32) + b1_ref[...]
        out1_buf[...] = jnp.maximum(out1, 0.0).astype(out1_buf.dtype)

        # Positions before the start of the sequence must be 0 as conv2
        # input (the reference zero-pads conv2).  Only the first time tile
        # can contain such columns, so gate the VPU mask on tstart < h2.
        @pl.when(tstart < h2)
        def _():
            col = lax.broadcasted_iota(jnp.int32, (Cout_p, W1), 1)
            out1_buf[...] = jnp.where(col + tstart >= h2, out1_buf[...],
                                      0).astype(out1_buf.dtype)
        # TODO(synk): dropout layers are identity (eval-mode semantics).

        # ---- conv2: same fused-tap trick, sliced from the VMEM scratch ---
        # (On v7x one may instead do K separate jnp.dot accumulations —
        #  MRB accumulates in place — avoiding this concat entirely.)
        x2 = jnp.concatenate(
            [out1_buf[:, h2 - (K - 1 - j) * dil:
                         h2 - (K - 1 - j) * dil + Tt] for j in range(K)],
            axis=0)                                        # (K*Cout_p, Tt)
        out2 = jnp.dot(w2_ref[...], x2,
                       preferred_element_type=jnp.float32) + b2_ref[...]
        out2 = jnp.maximum(out2, 0.0)                      # fp32 (Cout_p, Tt)

        # ---- residual branch: 1x1 conv (identity folded in by wrapper) ---
        res = jnp.dot(wd_ref[...], xw[:, halo_pad:halo_pad + Tt],
                      preferred_element_type=jnp.float32) + bd_ref[...]

        o_ref[...] = jnp.maximum(out2 + res, 0.0).astype(o_ref.dtype)

    return kernel


def tcn_block_forward(x, w1, b1, w2, b2, wd, bd, *, kernel_size, dilation,
                      compute_dtype=jnp.bfloat16, time_tile=1024,
                      out_dtype=None):
    """TCNBlock forward.

    x : (B, Cin, T)
    w1: (Cout, Cin, K)  effective (weight-normalized) conv1 weight
    w2: (Cout, Cout, K) effective (weight-normalized) conv2 weight
    wd: (Cout, Cin) 1x1 downsample weight, or None for identity residual
    b1, b2, bd: (Cout,) biases (bd ignored when wd is None)
    out_dtype: output dtype (default x.dtype); bf16 halves HBM writeback.
    Returns (B, Cout, T) in out_dtype.
    """
    B, Cin, T = x.shape
    Cout, _, K = w1.shape
    assert K == kernel_size
    dil = dilation
    h2 = (K - 1) * dil
    halo = 2 * h2                  # receptive-field history of the two convs

    out_dtype = x.dtype if out_dtype is None else out_dtype
    Cin_p = _round_up(Cin, 8)
    Cout_p = _round_up(Cout, 8)
    Tt = min(_round_up(time_tile, 128), _round_up(T, 128))
    T_pad = _round_up(T, Tt)
    nT = T_pad // Tt
    halo_pad = _round_up(halo, 128) if halo > 0 else 0
    W = halo_pad + Tt
    W1 = Tt + h2

    # ---- parameter prep (plain JAX glue) --------------------------------
    def stack_taps(w, cin, cin_p):     # (Cout, cin, K) -> (Cout_p, K*cin_p)
        wt = jnp.transpose(w, (0, 2, 1))                    # (Cout, K, cin)
        wt = jnp.pad(wt, ((0, Cout_p - Cout), (0, 0), (0, cin_p - cin)))
        return wt.reshape(Cout_p, K * cin_p).astype(compute_dtype)

    w1_stk = stack_taps(w1, Cin, Cin_p)
    w2_stk = stack_taps(w2, Cout, Cout_p)

    if wd is None:                     # identity residual (in_ch == out_ch)
        wd_eff = jnp.eye(Cout, Cin, dtype=jnp.float32)
        bd_eff = jnp.zeros((Cout,), jnp.float32)
    else:
        wd_eff, bd_eff = wd, bd
    wd_p = jnp.pad(wd_eff, ((0, Cout_p - Cout),
                            (0, Cin_p - Cin))).astype(compute_dtype)

    def pad_bias(bv):
        return jnp.pad(bv.astype(jnp.float32),
                       (0, Cout_p - Cout)).reshape(Cout_p, 1)

    b1_p, b2_p, bd_p = pad_bias(b1), pad_bias(b2), pad_bias(bd_eff)

    x_p = jnp.pad(x, ((0, 0), (0, Cin_p - Cin),
                      (halo_pad, T_pad - T))).astype(compute_dtype)

    # ---- VMEM footprint estimate -> explicit scoped-VMEM limit ----------
    bpe = jnp.dtype(compute_dtype).itemsize
    bpo = jnp.dtype(out_dtype).itemsize
    vmem_est = (2 * Cin_p * W * bpe                 # xbuf double buffer
                + Cout_p * W1 * bpe                 # out1 scratch
                + K * Cin_p * W1 * bpe              # x1 operand
                + K * Cout_p * Tt * bpe             # x2 operand
                + Cout_p * W1 * 4                   # f32 conv1 accumulator
                + 2 * Cout_p * Tt * 4               # f32 conv2 acc + residual
                + 2 * Cout_p * Tt * bpo             # double-buffered out tile
                + (K * Cin_p + K * Cout_p + Cin_p + 3) * Cout_p * 4)  # weights
    vmem_limit = int(min(64 * 1024 * 1024,
                         max(32 * 1024 * 1024, 2 * vmem_est)))

    flops = 2 * B * T_pad * Cout_p * (K * Cin_p + K * Cout_p + Cin_p)
    bytes_accessed = (B * Cin_p * (halo_pad + T_pad) * bpe       # input
                      + B * Cout_p * T_pad * bpo                 # output
                      + (K * Cin_p + K * Cout_p + Cin_p + 3) * Cout_p * bpe)

    kern = _make_tcn_kernel(K, dil, Cin_p, Cout_p, Tt, halo_pad, compute_dtype)
    out = pl.pallas_call(
        kern,
        out_shape=jax.ShapeDtypeStruct((B, Cout_p, T_pad), out_dtype),
        grid=(B, nT),
        in_specs=[
            pl.BlockSpec(memory_space=pl.ANY),                     # x (HBM)
            pl.BlockSpec((Cout_p, K * Cin_p), lambda b, t: (0, 0)),   # w1
            pl.BlockSpec((Cout_p, 1), lambda b, t: (0, 0)),           # b1
            pl.BlockSpec((Cout_p, K * Cout_p), lambda b, t: (0, 0)),  # w2
            pl.BlockSpec((Cout_p, 1), lambda b, t: (0, 0)),           # b2
            pl.BlockSpec((Cout_p, Cin_p), lambda b, t: (0, 0)),       # wd
            pl.BlockSpec((Cout_p, 1), lambda b, t: (0, 0)),           # bd
        ],
        out_specs=pl.BlockSpec((None, Cout_p, Tt), lambda b, t: (b, 0, t)),
        scratch_shapes=[
            pltpu.VMEM((2, Cin_p, W), compute_dtype),     # x window, 2 slots
            pltpu.VMEM((Cout_p, W1), compute_dtype),      # out1 scratch
            pltpu.SemaphoreType.DMA((2,)),
        ],
        compiler_params=pltpu.CompilerParams(
            # batch: parallel (2-core occupancy on v7x when B >= 2);
            # time: arbitrary (sequential -> cross-step DMA prefetch valid).
            dimension_semantics=("parallel", "arbitrary"),
            vmem_limit_bytes=vmem_limit),
        cost_estimate=pl.CostEstimate(flops=int(flops), transcendentals=0,
                                      bytes_accessed=int(bytes_accessed)),
    )(x_p, w1_stk, b1_p, w2_stk, b2_p, wd_p, bd_p)
    return out[:, :Cout, :T]


# ---------------------------------------------------------------------------
# pure-JAX reference of the PyTorch forward (eval-mode dropout)
# ---------------------------------------------------------------------------
def weight_norm_effective(v, g):
    """PyTorch weight_norm (dim=0): W = g * v / ||v|| per output channel."""
    norm = jnp.sqrt(jnp.sum(v * v, axis=(1, 2), keepdims=True))
    return g[:, None, None] * v / norm


def _causal_conv_ref(inp, w, b, dil):
    pad = (w.shape[-1] - 1) * dil
    y = lax.conv_general_dilated(
        inp, w, window_strides=(1,), padding=[(pad, 0)],
        rhs_dilation=(dil,), dimension_numbers=("NCH", "OIH", "NCH"),
        precision=lax.Precision.HIGHEST)
    return y + b[None, :, None]


def tcn_block_reference(x, w1, b1, w2, b2, wd, bd, *, dilation,
                        compute_dtype=jnp.float32):
    """`compute_dtype` mimics the kernel's matmul-input rounding so the bf16
    kernel can be checked with a tight tolerance."""
    rd = lambda a: a.astype(compute_dtype).astype(jnp.float32)
    xr = rd(x)
    if wd is None:
        res = xr
    else:
        res = _causal_conv_ref(xr, rd(wd)[:, :, None], bd, 1)
    o1 = jnp.maximum(_causal_conv_ref(xr, rd(w1), b1, dilation), 0.0)
    o2 = jnp.maximum(_causal_conv_ref(rd(o1), rd(w2), b2, dilation), 0.0)
    return jnp.maximum(o2 + res, 0.0)


if __name__ == "__main__":
    B, Cin, Cout, T = 2, 4, 8, 16
    K, DIL, DROPOUT = 3, 2, 0.1        # dropout unused (eval-mode identity)

    key = jax.random.PRNGKey(0)
    ks = jax.random.split(key, 8)
    v1 = 0.5 * jax.random.normal(ks[0], (Cout, Cin, K), jnp.float32)
    g1 = 1.0 + 0.1 * jax.random.normal(ks[1], (Cout,), jnp.float32)
    b1 = 0.1 * jax.random.normal(ks[2], (Cout,), jnp.float32)
    v2 = 0.5 * jax.random.normal(ks[3], (Cout, Cout, K), jnp.float32)
    g2 = 1.0 + 0.1 * jax.random.normal(ks[4], (Cout,), jnp.float32)
    b2 = 0.1 * jax.random.normal(ks[5], (Cout,), jnp.float32)
    wd = 0.5 * jax.random.normal(ks[6], (Cout, Cin), jnp.float32)
    bd = 0.1 * jax.random.normal(ks[7], (Cout,), jnp.float32)
    x = jax.random.normal(jax.random.PRNGKey(42), (B, Cin, T), jnp.float32)

    w1_eff = weight_norm_effective(v1, g1)      # (Cout, Cin, K)
    w2_eff = weight_norm_effective(v2, g2)      # (Cout, Cout, K)

    # 1) fp32 matmul path: exact check against the pure-JAX reference.
    out_f32 = jax.block_until_ready(tcn_block_forward(
        x, w1_eff, b1, w2_eff, b2, wd, bd,
        kernel_size=K, dilation=DIL, compute_dtype=jnp.float32))
    ref_f32 = tcn_block_reference(x, w1_eff, b1, w2_eff, b2, wd, bd,
                                  dilation=DIL, compute_dtype=jnp.float32)
    assert out_f32.shape == (B, Cout, T)
    assert jnp.allclose(out_f32, ref_f32, atol=1e-5, rtol=1e-5), \
        "fp32 kernel mismatch vs reference"

    # 2) bf16-matmul / fp32-accumulate path (default perf config).
    out_bf16 = jax.block_until_ready(tcn_block_forward(
        x, w1_eff, b1, w2_eff, b2, wd, bd,
        kernel_size=K, dilation=DIL, compute_dtype=jnp.bfloat16))
    ref_bf16 = tcn_block_reference(x, w1_eff, b1, w2_eff, b2, wd, bd,
                                   dilation=DIL, compute_dtype=jnp.bfloat16)
    assert jnp.allclose(out_bf16, ref_bf16, atol=2e-2, rtol=2e-2), \
        "bf16 kernel mismatch vs reference"

    # 3) identity-residual path (in_ch == out_ch -> nn.Identity downsample).
    x_sq = jax.random.normal(jax.random.PRNGKey(7), (B, Cout, T), jnp.float32)
    w1_sq = weight_norm_effective(
        0.5 * jax.random.normal(ks[0], (Cout, Cout, K), jnp.float32), g1)
    out_id = jax.block_until_ready(tcn_block_forward(
        x_sq, w1_sq, b1, w2_eff, b2, None, None,
        kernel_size=K, dilation=DIL, compute_dtype=jnp.float32))
    ref_id = tcn_block_reference(x_sq, w1_sq, b1, w2_eff, b2, None, None,
                                 dilation=DIL, compute_dtype=jnp.float32)
    assert jnp.allclose(out_id, ref_id, atol=1e-5, rtol=1e-5), \
        "identity-residual kernel mismatch vs reference"

    print("KERNEL_OK")
</pallas_src>

<mosaic_0001>
module attributes {stable_mosaic.version = 11 : i64} {
  func.func @kernel(%arg0: i32, %arg1: i32, %arg2: memref<2x8x256xf32, #tpu.memory_space<any>>, %arg3: memref<8x24xf32, #tpu.memory_space<vmem>>, %arg4: memref<8x1xf32, #tpu.memory_space<vmem>>, %arg5: memref<8x24xf32, #tpu.memory_space<vmem>>, %arg6: memref<8x1xf32, #tpu.memory_space<vmem>>, %arg7: memref<8x8xf32, #tpu.memory_space<vmem>>, %arg8: memref<8x1xf32, #tpu.memory_space<vmem>>, %arg9: memref<1x8x128xf32, #tpu.memory_space<vmem>>, %arg10: memref<2x8x256xf32, #tpu.memory_space<vmem>>, %arg11: memref<8x132xf32, #tpu.memory_space<vmem>>, %arg12: memref<2x!tpu.dma_semaphore, #tpu.memory_space<semaphore_mem>>) attributes {dimension_semantics = [#tpu.dimension_semantics<parallel>, #tpu.dimension_semantics<arbitrary>], iteration_bounds = array<i64: 2, 1>, scalar_prefetch = 0 : i64, scratch_operands = 3 : i64, tpu.core_type = #tpu.core_type<tc>, window_params = [{}, {pipeline_mode = #tpu.pipeline_mode<synchronous>, transform_indices = @transform_1, window_bounds = array<i64: 8, 24>}, {pipeline_mode = #tpu.pipeline_mode<synchronous>, transform_indices = @transform_2, window_bounds = array<i64: 8, 1>}, {pipeline_mode = #tpu.pipeline_mode<synchronous>, transform_indices = @transform_3, window_bounds = array<i64: 8, 24>}, {pipeline_mode = #tpu.pipeline_mode<synchronous>, transform_indices = @transform_4, window_bounds = array<i64: 8, 1>}, {pipeline_mode = #tpu.pipeline_mode<synchronous>, transform_indices = @transform_5, window_bounds = array<i64: 8, 8>}, {pipeline_mode = #tpu.pipeline_mode<synchronous>, transform_indices = @transform_6, window_bounds = array<i64: 8, 1>}, {transform_indices = @transform_7, window_bounds = array<i64: 1, 8, 128>}]} {
    %c2_i32 = arith.constant 2 : i32
    %c0_i32 = arith.constant 0 : i32
    %0 = arith.cmpi eq, %c2_i32, %c0_i32 : i32
    %c1_i32 = arith.constant 1 : i32
    %1 = arith.select %0, %c1_i32, %c2_i32 : i32
    %2 = arith.remsi %arg1, %1 : i32
    %c0_i32_0 = arith.constant 0 : i32
    %3 = arith.cmpi ne, %2, %c0_i32_0 : i32
    %c0_i32_1 = arith.constant 0 : i32
    %4 = arith.cmpi slt, %2, %c0_i32_1 : i32
    %c0_i32_2 = arith.constant 0 : i32
    %5 = arith.cmpi slt, %1, %c0_i32_2 : i32
    %6 = arith.xori %4, %5 : i1
    %7 = arith.andi %6, %3 : i1
    %8 = arith.addi %2, %1 : i32
    %9 = arith.select %7, %8, %2 : i32
    %c128_i32 = arith.constant 128 : i32
    %10 = arith.muli %arg1, %c128_i32 : i32
    %11 = tpu.assume_multiple %10, 128 : i32
    %c0_i32_3 = arith.constant 0 : i32
    %12 = arith.cmpi eq, %arg1, %c0_i32_3 : i32
    %13 = arith.extui %12 : i1 to i32
    %c0_i32_4 = arith.constant 0 : i32
    %14 = arith.cmpi ne, %13, %c0_i32_4 : i32
    scf.if %14 {
      %c128_i32_50 = arith.constant 128 : i32
      %73 = arith.muli %arg1, %c128_i32_50 : i32
      %74 = tpu.assume_multiple %73, 128 : i32
      %c0_i32_51 = arith.constant 0 : i32
      %75 = tpu.memref_slice %arg2[%arg0, %c0_i32_51, %74] : memref<2x8x256xf32, #tpu.memory_space<any>> -> memref<1x8x256xf32, #tpu.memory_space<any>>
      %76 = tpu.memref_squeeze %75 : memref<1x8x256xf32, #tpu.memory_space<any>> -> memref<8x256xf32, #tpu.memory_space<any>>
      %c0_i32_52 = arith.constant 0 : i32
      %c0_i32_53 = arith.constant 0 : i32
      %77 = tpu.memref_slice %arg10[%9, %c0_i32_52, %c0_i32_53] : memref<2x8x256xf32, #tpu.memory_space<vmem>> -> memref<1x8x256xf32, #tpu.memory_space<vmem>>
      %78 = tpu.memref_squeeze %77 : memref<1x8x256xf32, #tpu.memory_space<vmem>> -> memref<8x256xf32, #tpu.memory_space<vmem>>
      %79 = tpu.memref_slice %arg12[%9] : memref<2x!tpu.dma_semaphore, #tpu.memory_space<semaphore_mem>> -> memref<1x!tpu.dma_semaphore, #tpu.memory_space<semaphore_mem>>
      %80 = tpu.memref_squeeze %79 : memref<1x!tpu.dma_semaphore, #tpu.memory_space<semaphore_mem>> -> memref<!tpu.dma_semaphore, #tpu.memory_space<semaphore_mem>>
      tpu.enqueue_dma source(%76 : memref<8x256xf32, #tpu.memory_space<any>>) target(%78 : memref<8x256xf32, #tpu.memory_space<vmem>>) target_semaphore(%80 : memref<!tpu.dma_semaphore, #tpu.memory_space<semaphore_mem>>)
    } else {
    }
    %c1_i32_5 = arith.constant 1 : i32
    %15 = arith.addi %arg1, %c1_i32_5 : i32
    %c1_i32_6 = arith.constant 1 : i32
    %16 = arith.cmpi slt, %15, %c1_i32_6 : i32
    %17 = arith.extui %16 : i1 to i32
    %c0_i32_7 = arith.constant 0 : i32
    %18 = arith.cmpi ne, %17, %c0_i32_7 : i32
    scf.if %18 {
      %c1_i32_50 = arith.constant 1 : i32
      %73 = arith.addi %arg1, %c1_i32_50 : i32
      %c1_i32_51 = arith.constant 1 : i32
      %74 = arith.subi %c1_i32_51, %9 : i32
      %c128_i32_52 = arith.constant 128 : i32
      %75 = arith.muli %73, %c128_i32_52 : i32
      %76 = tpu.assume_multiple %75, 128 : i32
      %c0_i32_53 = arith.constant 0 : i32
      %77 = tpu.memref_slice %arg2[%arg0, %c0_i32_53, %76] : memref<2x8x256xf32, #tpu.memory_space<any>> -> memref<1x8x256xf32, #tpu.memory_space<any>>
      %78 = tpu.memref_squeeze %77 : memref<1x8x256xf32, #tpu.memory_space<any>> -> memref<8x256xf32, #tpu.memory_space<any>>
      %c0_i32_54 = arith.constant 0 : i32
      %c0_i32_55 = arith.constant 0 : i32
      %79 = tpu.memref_slice %arg10[%74, %c0_i32_54, %c0_i32_55] : memref<2x8x256xf32, #tpu.memory_space<vmem>> -> memref<1x8x256xf32, #tpu.memory_space<vmem>>
      %80 = tpu.memref_squeeze %79 : memref<1x8x256xf32, #tpu.memory_space<vmem>> -> memref<8x256xf32, #tpu.memory_space<vmem>>
      %81 = tpu.memref_slice %arg12[%74] : memref<2x!tpu.dma_semaphore, #tpu.memory_space<semaphore_mem>> -> memref<1x!tpu.dma_semaphore, #tpu.memory_space<semaphore_mem>>
      %82 = tpu.memref_squeeze %81 : memref<1x!tpu.dma_semaphore, #tpu.memory_space<semaphore_mem>> -> memref<!tpu.dma_semaphore, #tpu.memory_space<semaphore_mem>>
      tpu.enqueue_dma source(%78 : memref<8x256xf32, #tpu.memory_space<any>>) target(%80 : memref<8x256xf32, #tpu.memory_space<vmem>>) target_semaphore(%82 : memref<!tpu.dma_semaphore, #tpu.memory_space<semaphore_mem>>)
    } else {
    }
    %c128_i32_8 = arith.constant 128 : i32
    %19 = arith.muli %arg1, %c128_i32_8 : i32
    %20 = tpu.assume_multiple %19, 128 : i32
    %c0_i32_9 = arith.constant 0 : i32
    %21 = tpu.memref_slice %arg2[%arg0, %c0_i32_9, %20] : memref<2x8x256xf32, #tpu.memory_space<any>> -> memref<1x8x256xf32, #tpu.memory_space<any>>
    %22 = tpu.memref_squeeze %21 : memref<1x8x256xf32, #tpu.memory_space<any>> -> memref<8x256xf32, #tpu.memory_space<any>>
    %c0_i32_10 = arith.constant 0 : i32
    %c0_i32_11 = arith.constant 0 : i32
    %23 = tpu.memref_slice %arg10[%9, %c0_i32_10, %c0_i32_11] : memref<2x8x256xf32, #tpu.memory_space<vmem>> -> memref<1x8x256xf32, #tpu.memory_space<vmem>>
    %24 = tpu.memref_squeeze %23 : memref<1x8x256xf32, #tpu.memory_space<vmem>> -> memref<8x256xf32, #tpu.memory_space<vmem>>
    %25 = tpu.memref_slice %arg12[%9] : memref<2x!tpu.dma_semaphore, #tpu.memory_space<semaphore_mem>> -> memref<1x!tpu.dma_semaphore, #tpu.memory_space<semaphore_mem>>
    %26 = tpu.memref_squeeze %25 : memref<1x!tpu.dma_semaphore, #tpu.memory_space<semaphore_mem>> -> memref<!tpu.dma_semaphore, #tpu.memory_space<semaphore_mem>>
    tpu.wait_dma2 semaphore(%26 : memref<!tpu.dma_semaphore, #tpu.memory_space<semaphore_mem>>) src(%22 : memref<8x256xf32, #tpu.memory_space<any>>) dst(%24 : memref<8x256xf32, #tpu.memory_space<vmem>>)
    %c0_i32_12 = arith.constant 0 : i32
    %c0_i32_13 = arith.constant 0 : i32
    %27 = tpu.memref_slice %arg10[%9, %c0_i32_12, %c0_i32_13] : memref<2x8x256xf32, #tpu.memory_space<vmem>> -> memref<1x8x256xf32, #tpu.memory_space<vmem>>
    %28 = tpu.memref_squeeze %27 : memref<1x8x256xf32, #tpu.memory_space<vmem>> -> memref<8x256xf32, #tpu.memory_space<vmem>>
    %c0 = arith.constant 0 : index
    %c120 = arith.constant 120 : index
    %29 = vector.load %28[%c0, %c120] : memref<8x256xf32, #tpu.memory_space<vmem>>, vector<8x132xf32>
    %c0_i32_14 = arith.constant 0 : i32
    %c0_i32_15 = arith.constant 0 : i32
    %30 = tpu.memref_slice %arg10[%9, %c0_i32_14, %c0_i32_15] : memref<2x8x256xf32, #tpu.memory_space<vmem>> -> memref<1x8x256xf32, #tpu.memory_space<vmem>>
    %31 = tpu.memref_squeeze %30 : memref<1x8x256xf32, #tpu.memory_space<vmem>> -> memref<8x256xf32, #tpu.memory_space<vmem>>
    %c0_16 = arith.constant 0 : index
    %c122 = arith.constant 122 : index
    %32 = vector.load %31[%c0_16, %c122] : memref<8x256xf32, #tpu.memory_space<vmem>>, vector<8x132xf32>
    %c0_i32_17 = arith.constant 0 : i32
    %c0_i32_18 = arith.constant 0 : i32
    %33 = tpu.memref_slice %arg10[%9, %c0_i32_17, %c0_i32_18] : memref<2x8x256xf32, #tpu.memory_space<vmem>> -> memref<1x8x256xf32, #tpu.memory_space<vmem>>
    %34 = tpu.memref_squeeze %33 : memref<1x8x256xf32, #tpu.memory_space<vmem>> -> memref<8x256xf32, #tpu.memory_space<vmem>>
    %c0_19 = arith.constant 0 : index
    %c124 = arith.constant 124 : index
    %35 = vector.load %34[%c0_19, %c124] : memref<8x256xf32, #tpu.memory_space<vmem>>, vector<8x132xf32>
    %36 = tpu.concatenate %29, %32, %35 in 0 : vector<8x132xf32>, vector<8x132xf32>, vector<8x132xf32> -> vector<24x132xf32>
    %c0_20 = arith.constant 0 : index
    %c0_21 = arith.constant 0 : index
    %37 = vector.load %arg3[%c0_20, %c0_21] : memref<8x24xf32, #tpu.memory_space<vmem>>, vector<8x24xf32>
    %cst = arith.constant dense<0.000000e+00> : vector<8x132xf32>
    %38 = tpu.matmul %37, %36, %cst {dimension_numbers = #tpu.dot_dimension_numbers<[1], [0], [0], [1], [0, 0, 1, 1], [], []>} : vector<8x24xf32>, vector<24x132xf32>, vector<8x132xf32> -> vector<8x132xf32>
    %c0_22 = arith.constant 0 : index
    %c0_23 = arith.constant 0 : index
    %39 = vector.load %arg4[%c0_22, %c0_23] : memref<8x1xf32, #tpu.memory_space<vmem>>, vector<8x1xf32>
    %40 = vector.broadcast %39 : vector<8x1xf32> to vector<8x132xf32>
    %41 = arith.addf %38, %40 : vector<8x132xf32>
    %cst_24 = arith.constant 0.000000e+00 : f32
    %42 = vector.broadcast %cst_24 : f32 to vector<8x132xf32>
    %43 = arith.maximumf %41, %42 : vector<8x132xf32>
    %c0_25 = arith.constant 0 : index
    %c0_26 = arith.constant 0 : index
    %44 = vector.load %arg11[%c0_25, %c0_26] : memref<8x132xf32, #tpu.memory_space<vmem>>, vector<8x132xf32>
    tpu.vector_store %arg11[%c0_25, %c0_26], %43 {strides = array<i32>} : memref<8x132xf32, #tpu.memory_space<vmem>>, vector<8x132xf32>,
    %c4_i32 = arith.constant 4 : i32
    %45 = arith.cmpi slt, %11, %c4_i32 : i32
    %46 = arith.extui %45 : i1 to i32
    %c0_i32_27 = arith.constant 0 : i32
    %47 = arith.cmpi ne, %46, %c0_i32_27 : i32
    scf.if %47 {
      %73 = tpu.iota {dimensions = array<i32: 1>} : vector<8x132xi32>
      %74 = vector.broadcast %11 : i32 to vector<8x132xi32>
      %75 = arith.addi %73, %74 : vector<8x132xi32>
      %c4_i32_50 = arith.constant 4 : i32
      %76 = vector.broadcast %c4_i32_50 : i32 to vector<8x132xi32>
      %77 = arith.cmpi sge, %75, %76 : vector<8x132xi32>
      %c0_51 = arith.constant 0 : index
      %c0_52 = arith.constant 0 : index
      %78 = vector.load %arg11[%c0_51, %c0_52] : memref<8x132xf32, #tpu.memory_space<vmem>>, vector<8x132xf32>
      %c0_i32_53 = arith.constant 0 : i32
      %79 = arith.sitofp %c0_i32_53 : i32 to f32
      %80 = vector.broadcast %79 : f32 to vector<8x132xf32>
      %81 = arith.select %77, %78, %80 : vector<8x132xi1>, vector<8x132xf32>
      %c0_54 = arith.constant 0 : index
      %c0_55 = arith.constant 0 : index
      %82 = vector.load %arg11[%c0_54, %c0_55] : memref<8x132xf32, #tpu.memory_space<vmem>>, vector<8x132xf32>
      tpu.vector_store %arg11[%c0_54, %c0_55], %81 {strides = array<i32>} : memref<8x132xf32, #tpu.memory_space<vmem>>, vector<8x132xf32>,
    } else {
    }
    %c0_28 = arith.constant 0 : index
    %c0_29 = arith.constant 0 : index
    %48 = vector.load %arg11[%c0_28, %c0_29] : memref<8x132xf32, #tpu.memory_space<vmem>>, vector<8x128xf32>
    %c0_30 = arith.constant 0 : index
    %c2 = arith.constant 2 : index
    %49 = vector.load %arg11[%c0_30, %c2] : memref<8x132xf32, #tpu.memory_space<vmem>>, vector<8x128xf32>
    %c0_31 = arith.constant 0 : index
    %c4 = arith.constant 4 : index
    %50 = vector.load %arg11[%c0_31, %c4] : memref<8x132xf32, #tpu.memory_space<vmem>>, vector<8x128xf32>
    %51 = tpu.concatenate %48, %49, %50 in 0 : vector<8x128xf32>, vector<8x128xf32>, vector<8x128xf32> -> vector<24x128xf32>
    %c0_32 = arith.constant 0 : index
    %c0_33 = arith.constant 0 : index
    %52 = vector.load %arg5[%c0_32, %c0_33] : memref<8x24xf32, #tpu.memory_space<vmem>>, vector<8x24xf32>
    %cst_34 = arith.constant dense<0.000000e+00> : vector<8x128xf32>
    %53 = tpu.matmul %52, %51, %cst_34 {dimension_numbers = #tpu.dot_dimension_numbers<[1], [0], [0], [1], [0, 0, 1, 1], [], []>} : vector<8x24xf32>, vector<24x128xf32>, vector<8x128xf32> -> vector<8x128xf32>
    %c0_35 = arith.constant 0 : index
    %c0_36 = arith.constant 0 : index
    %54 = vector.load %arg6[%c0_35, %c0_36] : memref<8x1xf32, #tpu.memory_space<vmem>>, vector<8x1xf32>
    %55 = vector.broadcast %54 : vector<8x1xf32> to vector<8x128xf32>
    %56 = arith.addf %53, %55 : vector<8x128xf32>
    %cst_37 = arith.constant 0.000000e+00 : f32
    %57 = vector.broadcast %cst_37 : f32 to vector<8x128xf32>
    %58 = arith.maximumf %56, %57 : vector<8x128xf32>
    %c0_38 = arith.constant 0 : index
    %c0_39 = arith.constant 0 : index
    %59 = vector.load %arg7[%c0_38, %c0_39] : memref<8x8xf32, #tpu.memory_space<vmem>>, vector<8x8xf32>
    %c0_i32_40 = arith.constant 0 : i32
    %c0_i32_41 = arith.constant 0 : i32
    %60 = tpu.memref_slice %arg10[%9, %c0_i32_40, %c0_i32_41] : memref<2x8x256xf32, #tpu.memory_space<vmem>> -> memref<1x8x256xf32, #tpu.memory_space<vmem>>
    %61 = tpu.memref_squeeze %60 : memref<1x8x256xf32, #tpu.memory_space<vmem>> -> memref<8x256xf32, #tpu.memory_space<vmem>>
    %c0_42 = arith.constant 0 : index
    %c128 = arith.constant 128 : index
    %62 = vector.load %61[%c0_42, %c128] : memref<8x256xf32, #tpu.memory_space<vmem>>, vector<8x128xf32>
    %cst_43 = arith.constant dense<0.000000e+00> : vector<8x128xf32>
    %63 = tpu.matmul %59, %62, %cst_43 {dimension_numbers = #tpu.dot_dimension_numbers<[1], [0], [0], [1], [0, 0, 1, 1], [], []>} : vector<8x8xf32>, vector<8x128xf32>, vector<8x128xf32> -> vector<8x128xf32>
    %c0_44 = arith.constant 0 : index
    %c0_45 = arith.constant 0 : index
    %64 = vector.load %arg8[%c0_44, %c0_45] : memref<8x1xf32, #tpu.memory_space<vmem>>, vector<8x1xf32>
    %65 = vector.broadcast %64 : vector<8x1xf32> to vector<8x128xf32>
    %66 = arith.addf %63, %65 : vector<8x128xf32>
    %67 = arith.addf %58, %66 : vector<8x128xf32>
    %cst_46 = arith.constant 0.000000e+00 : f32
    %68 = vector.broadcast %cst_46 : f32 to vector<8x128xf32>
    %69 = arith.maximumf %67, %68 : vector<8x128xf32>
    %c0_47 = arith.constant 0 : index
    %c0_48 = arith.constant 0 : index
    %c0_49 = arith.constant 0 : index
    %70 = vector.load %arg9[%c0_47, %c0_48, %c0_49] : memref<1x8x128xf32, #tpu.memory_space<vmem>>, vector<1x8x128xf32>
    %71 = vector.shape_cast %70 : vector<1x8x128xf32> to vector<8x128xf32>
    %72 = vector.shape_cast %69 : vector<8x128xf32> to vector<1x8x128xf32>
    tpu.vector_store %arg9[%c0_47, %c0_48, %c0_49], %72 {strides = array<i32>} : memref<1x8x128xf32, #tpu.memory_space<vmem>>, vector<1x8x128xf32>,
    return
  }
  func.func @transform_1(%arg0: i32, %arg1: i32) -> (i32, i32) {
    %c0_i32 = arith.constant 0 : i32
    %c0_i32_0 = arith.constant 0 : i32
    %c0_i32_1 = arith.constant 0 : i32
    return %c0_i32, %c0_i32_0 : i32, i32
  }
  func.func @transform_2(%arg0: i32, %arg1: i32) -> (i32, i32) {
    %c0_i32 = arith.constant 0 : i32
    %c0_i32_0 = arith.constant 0 : i32
    %c0_i32_1 = arith.constant 0 : i32
    return %c0_i32, %c0_i32_0 : i32, i32
  }
  func.func @transform_3(%arg0: i32, %arg1: i32) -> (i32, i32) {
    %c0_i32 = arith.constant 0 : i32
    %c0_i32_0 = arith.constant 0 : i32
    %c0_i32_1 = arith.constant 0 : i32
    return %c0_i32, %c0_i32_0 : i32, i32
  }
  func.func @transform_4(%arg0: i32, %arg1: i32) -> (i32, i32) {
    %c0_i32 = arith.constant 0 : i32
    %c0_i32_0 = arith.constant 0 : i32
    %c0_i32_1 = arith.constant 0 : i32
    return %c0_i32, %c0_i32_0 : i32, i32
  }
  func.func @transform_5(%arg0: i32, %arg1: i32) -> (i32, i32) {
    %c0_i32 = arith.constant 0 : i32
    %c0_i32_0 = arith.constant 0 : i32
    %c0_i32_1 = arith.constant 0 : i32
    return %c0_i32, %c0_i32_0 : i32, i32
  }
  func.func @transform_6(%arg0: i32, %arg1: i32) -> (i32, i32) {
    %c0_i32 = arith.constant 0 : i32
    %c0_i32_0 = arith.constant 0 : i32
    %c0_i32_1 = arith.constant 0 : i32
    return %c0_i32, %c0_i32_0 : i32, i32
  }
  func.func @transform_7(%arg0: i32, %arg1: i32) -> (i32, i32, i32) {
    %c0_i32 = arith.constant 0 : i32
    %c0_i32_0 = arith.constant 0 : i32
    return %arg0, %c0_i32, %arg1 : i32, i32, i32
  }
}

</mosaic_0001>

<bundles_post_ra>
// kernel: tpu_custom_call.1
= control target key start
LH: loop header
LB: loop body
LE: loop exit
PB: predicated region body
PF: predicated region fallthrough
CT: control target
= control target key end

     0   :  { %12 = vsyncpa [#allocation6], 0  ;;  %s1205_s0 = inlined_call_operand.hbm [shape: f32[2,8,256], index: 0, kind: input, shape index: {}]   ;;  %s1206_s1 = inlined_call_operand.vmem [shape: f32[8,24], index: 1, kind: input, shape index: {}]   ;;  %s1207_s2 = inlined_call_operand.vmem [shape: f32[8,1], index: 2, kind: input, shape index: {}]   ;;  %s1208_s3 = inlined_call_operand.vmem [shape: f32[8,24], index: 3, kind: input, shape index: {}]   ;;  %s1209_s4 = inlined_call_operand.vmem [shape: f32[8,1], index: 4, kind: input, shape index: {}]   ;;  %s1210_s5 = inlined_call_operand.vmem [shape: f32[8,8], index: 5, kind: input, shape index: {}]   ;;  %s1211_s6 = inlined_call_operand.vmem [shape: f32[8,1], index: 6, kind: input, shape index: {}]   ;;  %s1212_s7 = inlined_call_operand.hbm [shape: f32[2,8,128], index: 7, kind: output, shape index: {}]  }
   0x1   :  { %14 = vsyncpa [#allocation6 + $0x1], 0  ;;  %s1036_s24 = smov 0   ;;  %s1038_s25 = smov 0  }
   0x2   :  { %s1040_s26 = smov 0   ;;  %s1042_s27 = smov 0  }
   0x3   :  { %s1044_s28 = smov 0   ;;  %s1046_s29 = smov 0  }
   0x4 LB: > { %s744_s30 = sadd.s32 4294967295, %s984_s29   ;;  %s745_s8 = sadd.s32 4294967294, %s984_s29   ;;  %s984_s29 = sphi %s1046_s29, %s20_s29   ;;  %s980_s28 = sphi %s1044_s28, %s1222_s28   ;;  %s976_s27 = sphi %s1042_s27, %s1221_s27   ;;  %s972_s26 = sphi %s1040_s26, %s1220_s26   ;;  %s968_s25 = sphi %s1038_s25, %s1219_s25   ;;  %s964_s24 = sphi %s1036_s24, %s1218_s24  }
   0x5   : > { %s32_s9 = sadd.s32 1, %s980_s28  ;;  %s167_s10 = sadd.s32 1, %s972_s26 }
   0x6   : > { %p34_p0 = scmp.ge.s32.totalorder %s32_s9, 2  ;;  %p177_p1 = scmp.ne.s32.totalorder %s972_s26, %s968_s25 }
   0x7   : > { %p178_p2 = scmp.eq.s32.totalorder %s744_s30, 1  ;;  %p183_p3 = scmp.ne.s32.totalorder %s968_s25, %s964_s24 }
   0x8   : > { %s1224_s9 = smov (%p34_p0, %s32_s9), 0  ;;  %p184_p5 = scmp.eq.s32.totalorder %s745_s8, 1 }
   0x9   : > { %1214 = sst [smem:[#allocation15_spill]] %s1224_s9  ;;  %p1076_p4 = por %p178_p2, %p177_p1 }
   0xa   : > { %s162_s12 = ssub.s32 %s980_s28, %s1224_s9  ;;  %p747_p6 = scmp.ge.s32.totalorder %s984_s29, 1 }
   0xb   : > { %p165_p7 = scmp.eq.s32.totalorder %s162_s12, 0  ;;  %p1083_p8 = por %p184_p5, %p183_p3 }
   0xc   : > { %p220_p9 = scmp.lt.s32.totalorder %s984_s29, 3 }
   0xd   : > { %s1089_s14 = scalar_select %p165_p7, %s972_s26, %s167_s10  }
   0xe   : > { %p221_p10 = pnand %p747_p6, %p220_p9 }
   0xf   : > { %s242_s15 = sand.u32 (!%p221_p10), 1, %s968_s25   ;;  %s762_s16 = sshll.u32 (!%p221_p10), %s976_s27, 8 }
  0x10   : > { %224 = sbr.rel (%p221_p10) target bundleno = 883 (0x373), region = 44  ;;  %s1095_s17 = sshll.u32 (!%p221_p10), %s242_s15, 3 }
  0x11   : > { %s267_s20 = scalar_lea.hbm (!%p221_p10), %s1205_s0, %s762_s16  ;;  %s986_s21 = smov (!%p221_p10), [#allocation2]  }
  0x12   : > { %s279_s22 = sshll.u32 (!%p221_p10), %s986_s21, 4  ;;  %s880_s23 = scalar_lea.hbm (!%p221_p10), %s267_s20, 256  ;;  %s280_s22 = int_to_ptr.vmem [resolvable:$true] %s279_s22 }
  0x13   : > { %p881_p11 = scmp.ne.s32.totalorder (!%p221_p10), %s267_s20, %s880_s23  ;;  %s882_s10 = scalar_lea.hbm (!%p221_p10), %s1205_s0, 512 }
  0x14   : > { %p883_p12 = scmp.lt.u32.totalorder (!%p221_p10), %s267_s20, %s1205_s0  ;;  %p884_p13 = scmp.lt.u32.totalorder (!%p221_p10), %s882_s10, %s880_s23 }
  0x15   : > { %p886_p1 = scmp.lt.u32.totalorder (!%p221_p10), %s880_s23, %s267_s20 }
  0x16   : > { %p885_p0 = por (!%p221_p10), %p884_p13, %p883_p12 }
  0x18   : > { %p887_p2 = por %p886_p1, %p885_p0 }
  0x1a   : > { %p888_p3 = pnand %p887_p2, %p881_p11 }
  0x1c   : > { %891 = shalt.err (!%p888_p3)  }
  0x1d   : > { %s892_s16 = scalar_lea.vmem %s280_s22, 256  ;;  %s896_s18 = scalar_lea.vmem %s280_s22, 512 }
  0x1e   : > { %p893_p5 = scmp.ne.s32.totalorder %s280_s22, %s892_s16  ;;  %p897_p6 = scmp.lt.s32.totalorder %s280_s22, %s280_s22 }
  0x1f   : > { %p898_p7 = scmp.lt.s32.totalorder %s896_s18, %s892_s16 }
  0x21   : > { %p899_p9 = por %p898_p7, %p897_p6 }
  0x23   : > { %p900_p10 = pnand %p899_p9, %p893_p5 }
  0x25   : > { %903 = shalt.err (!%p900_p10)  }
  0x26   : > { %282 = dma.hbm_to_vmem [thread:$0]  %s267_s20, 256, %s280_s22, [#allocation4] }
  0x27   : > { %s244_s19 = scalar_lea.vmem [#allocation5], %s1095_s17 }
  0x28   : > { %956 = dma.done.wait [#allocation4], 256 }
  0x29   : > { %957 = vsyncadd [#allocation4], 4294967040  ;;  %v319_v0 = vld [vmem:[#allocation2] sm:$0xff]  ;;  %v320_v1 = vld [vmem:[#allocation2 + $0x8] sm:$0xff]  ;;  %s987_s9 = smov 124   ;;  %s988_s21 = smov 126   ;;  %v448_v28 = vlaneseq }
  0x2a   : > { %v855_v2 = vpack.i.bf16 %v320_v1, %v319_v0  ;;  %331 = vrot.lane.b32.xlu1 %v320_v1, %s987_s9  ;;  %s989_s23 = smov 8   ;;  %vm327_vm0 = vcmask 1031168   ;;  %vm333_vm1 = vcmask 1014784   ;;  %v990_v7 = vmov 0.0   ;;  %v336_v13 = vld [vmem:[%s1207_s2] sm:$0xff]  ;;  %s757_s22 = sshll.u32 %s976_s27, 7 }
  0x2b   : > { %432 = vmatprep.mubr.f32.mxu0 %v990_v7  ;;  %v991_v11 = vmov 0   ;;  %vm354_vm2 = vcmask 64512   ;;  %v335_v27 = vld [vmem:[%s1206_s1] sm:$0xff]  ;;  %vm364_vm3 = vcmask 195584   ;;  %v449_v30 = vand.u32 127, %v448_v28  ;;  %s658_s30 = sshll.u32 %s244_s19, 4  ;;  %s1154_s12 = scalar_lea.hbm %s1212_s7, %s757_s22  ;;  %s1156_s30 = int_to_ptr.vmem [resolvable:$true] %s658_s30 }
  0x2c   : > { %856 = vrot.lane.b32.xlu0 %v855_v2, %s988_s21  ;;  %870 = vset.pattern.permute.xlu1 %v991_v11  ;;  %vm442_vm5 = vcmask 31744   ;;  %v479_v38 = vld [vmem:[%s1209_s4] sm:$0xff]  ;;  %v992_v40 = vmov 0.0|0.0   ;;  %vm993_vm6 = vmmov 0   ;;  %vm994_vm7 = vmmov 1   ;;  %s644_s16 = scalar_lea.sflag [#allocation6], %s242_s15 }
  0x2d   : > { %876 = vset.pattern.permute.xlu0 %v991_v11  ;;  %vm454_vm4 = vcmp.ge.s32.totalorder %v449_v30, 4  ;;  %789 = vmatprep.subr.bf16.mxu1 %v992_v40  ;;  %v559_v42 = vld [vmem:[%s1210_s5] sm:$0xff]  ;;  %s904_s18 = scalar_lea.vmem %s1156_s30, 128  ;;  %s995_s27 = smov [#allocation5]  }
  0x2e   : > { %861 = vrot.lane.b32.xlu1 %v855_v2, %s989_s23  ;;  %777 = vmatprep.mubr.msk.f32.mxu1 %vm993_vm6, %v990_v7  ;;  %v561_v44 = vld [vmem:[%s1211_s6] sm:$0xff]  ;;  %vm877_vm8 = vmpackc.low %vm994_vm7, %vm454_vm4  ;;  %p905_p11 = scmp.ne.s32.totalorder %s1156_s30, %s904_s18 }
  0x2f   : > { %v478_v52 = vld [vmem:[%s1208_s3] sm:$0xff] }
  0x30   : > { %329 = vrot.lane.b32.xlu0 %v319_v0, %s987_s9  ;;  %p906_p12 = pnand %p905_p11, %p1076_p4 }
  0x32   : > { %p907_p13 = pneg %p906_p12 }
  0x9c   : > { %v332_v6 = vpop.permute.xlu1 %331 }
  0x9e   : > { %v857_v3 = vpop.permute.xlu0 %856 }
  0x9f   : > { %v859_v4 = vunpack.i.h.bf16 %v857_v3  ;;  %v858_v5 = vunpack.i.l.bf16 %v857_v3 }
  0xa0   : > { %v862_v14 = vpop.permute.xlu1 %861 }
  0xa1   : > { %v328_v8 = vsel %vm327_vm0, %v858_v5, %v859_v4  ;;  %v864_v15 = vunpack.i.h.bf16 %v862_v14  ;;  %v863_v16 = vunpack.i.l.bf16 %v862_v14 }
  0xa2   : > { %v865_v9 = vpack.i.bf16 %v859_v4, %v328_v8  ;;  %v330_v10 = vpop.permute.xlu0 %329 }
  0xa3   : > { %v334_v12 = vsel %vm333_vm1, %v330_v10, %v332_v6  ;;  %v355_v20 = vsel %vm354_vm2, %v863_v16, %v864_v15 }
  0xa4   : > { %866 = vrot.lane.b32.xlu0 %v865_v9, %s989_s23  ;;  %350 = vrot.lane.b32.xlu1 %v334_v12, %s989_s23 }
  0xa8   : > { %352 = vrot.lane.b32.xlu0 %v332_v6, %s989_s23  ;;  %339 = vperm.xlu1 %870, %v336_v13   ;;  %s908_s23 = sshll.u32 %s995_s27, 4  ;;  %s909_s23 = int_to_ptr.vmem [resolvable:$false] %s908_s23 }
  0xa9   : > { %s910_s20 = scalar_lea.vmem %s909_s23, 256  ;;  %p911_p0 = scmp.lt.s32.totalorder %s1156_s30, %s909_s23 }
  0xaa   : > { %p912_p1 = scmp.lt.s32.totalorder %s910_s20, %s904_s18 }
  0xac   : > { %p913_p2 = por %p912_p1, %p911_p0 }
  0xae   : > { %p914_p3 = pnand %p913_p2, %p907_p13 }
 0x116   : > { %v867_v17 = vpop.permute.xlu0 %866  ;;  %v351_v24 = vpop.permute.xlu1 %350 }
 0x117   : > { %v869_v18 = vunpack.i.h.bf16 %v867_v17  ;;  %v868_v19 = vunpack.i.l.bf16 %v867_v17 }
 0x119   : > { %v785_v21 = vpack.c.bf16 %v869_v18, %v864_v15  ;;  %v356_v22 = vsel %vm354_vm2, %v868_v19, %v869_v18 }
 0x11a   : > { %v787_v23 = vpack.c.bf16 %v356_v22, %v355_v20  ;;  %v353_v25 = vpop.permute.xlu0 %352 }
 0x11b   : > { %786 = vmatprep.subr.bf16.mxu0 %v785_v21  ;;  %v357_v26 = vsel %vm354_vm2, %v351_v24, %v353_v25 }
 0x11c   : > { %788 = vmatpush1.bf16.msra.mxu0 %v787_v23 }
 0x11d   : > { %372 = vmatprep.subr.mxu0 %v353_v25 }
 0x120   : > { %373 = vmatpush1.msra.mxu0 %v357_v26 }
 0x121   : > { %753 = vmatmul.mubr.msk.f32.vlgmr.msra.gmra.mrb[0].mxu0 %vm364_vm3, %v335_v27  ;;  %780 = vmatprep.subr.mxu0 %v990_v7 }
 0x122   : > { %781 = vmatpush3.msra.mxu0 %v320_v1  ;;  %782 = vmatprep.mubr.msk.f32.mxu0 %vm993_vm6, %v990_v7 }
 0x125   : > { %783 = vmatmul.mubr.msk.f32.vlgmr.msra.gmra.mrb[2].mxu0 %vm354_vm2, %v559_v42 }
 0x127   : > { %v340_v29 = vpop.permute.xlu1 %339 }
 0x1f4   : > { %v434_v31 = vpop.f32.mrb[0].mxu0 }
 0x1f5   : > { %v435_v32 = vadd.f32 %v434_v31, %v340_v29  ;;  %v436_v33 = vpop.f32.mrb[1].mxu0 }
 0x1f6   : > { %v437_v34 = vadd.f32 %v436_v33, %v340_v29 }
 0x1f7   : > { %v439_v35 = vmax.f32 %v435_v32, 0.0 }
 0x1f8   : > { %v440_v36 = vmax.f32 %v437_v34, 0.0  ;;  %v636_v54 = vpop.f32.mrb[2].mxu0 }
 0x1f9   : > { %v458_v37 = vsel %vm454_vm4, %v439_v35, 0.0  ;;  %v784_v55 = vpop.f32.mrb[3].mxu0 }
 0x1fa   : > { %443 = vst.msk [vmem:[#allocation3 + $0x8] sm:$0xff] %vm442_vm5, %v440_v36  ;;  %472 = vrot.lane.b32.xlu1 %v458_v37, %s987_s9 }
 0x1fe   : > { %482 = vperm.xlu1 %870, %v479_v38  }
 0x201   : > { %v457_v39 = vld [vmem:[#allocation3 + $0x8] sm:$0xff] }
 0x202   : > { %461 = vst.msk [vmem:[#allocation3 + $0x8] sm:$0xff] %vm442_vm5, %v457_v39 }
 0x209   : > { %v463_v41 = vld [vmem:[#allocation3 + $0x8] sm:$0xff] }
 0x20a   : > { %v871_v43 = vpack.i.bf16 %v463_v41, %v458_v37 }
 0x20c   : > { %872 = vrot.lane.b32.xlu0 %v871_v43, %s988_s21 }
 0x210   : > { %474 = vrot.lane.b32.xlu0 %v463_v41, %s987_s9 }
 0x214   : > { %564 = vperm.xlu0 %876, %v561_v44  }
 0x26c   : > { %v473_v51 = vpop.permute.xlu1 %472 }
 0x27d   : > { %v483_v57 = vpop.permute.xlu1 %482 }
 0x27e   : > { %v873_v45 = vpop.permute.xlu0 %872 }
 0x27f   : > { %v875_v46 = vunpack.i.h.bf16 %v873_v45  ;;  %v874_v47 = vunpack.i.l.bf16 %v873_v45 }
 0x281   : > { %v470_v48 = vsel %vm327_vm0, %v874_v47, %v875_v46 }
 0x282   : > { %v475_v49 = vpop.permute.xlu0 %474  ;;  %v878_v50 = vpack.c.bf16 %v470_v48, %v439_v35 }
 0x283   : > { %v476_v53 = vsel %vm333_vm1, %v473_v51, %v475_v49 }
 0x284   : > { %879 = vmatpush3.bf16.msk.msra.mxu1 %vm877_vm8, %v878_v50 }
 0x285   : > { %775 = vmatprep.subr.mxu1 %v990_v7 }
 0x288   : > { %776 = vmatpush3.msra.mxu1 %v476_v53 }
 0x289   : > { %778 = vmatmul.mubr.msk.f32.vlgmr.msra.gmra.mrb[0].mxu1 %vm364_vm3, %v478_v52 }
 0x293   : > { %v565_v56 = vpop.permute.xlu0 %564 }
 0x294   : > { %v637_v61 = vadd.f32 %v636_v54, %v565_v56 }
 0x35c   : > { %v554_v58 = vpop.f32.mrb[0].mxu1 }
 0x35d   : > { %v555_v59 = vadd.f32 %v554_v58, %v483_v57  ;;  %v779_v60 = vpop.f32.mrb[1].mxu1 }
 0x35f   : > { %v558_v62 = vmax.f32 %v555_v59, 0.0 }
 0x361   : > { %v640_v63 = vadd.f32 %v637_v61, %v558_v62 }
 0x363   : > { %v641_v0 = vmax.f32 %v640_v63, 0.0 }
 0x365   : > { %642 = vst [vmem:[%s244_s19] sm:$0xff] %v641_v0 }
 0x366   : > { %917 = shalt.err (!%p914_p3)
}
 0x367   : > { %s918_s15 = scalar_lea.hbm %s1154_s12, 128  ;;  %s922_s9 = scalar_lea.hbm %s1212_s7, 256 }
 0x368   : > { %p919_p5 = scmp.ne.s32.totalorder %s1154_s12, %s918_s15  ;;  %p923_p9 = scmp.lt.u32.totalorder %s1154_s12, %s1212_s7 }
 0x369   : > { %p924_p10 = scmp.lt.u32.totalorder %s922_s9, %s918_s15  ;;  %p926_p12 = scmp.lt.u32.totalorder %s918_s15, %s1154_s12 }
 0x36a   : > { %p920_p6 = pnand %p919_p5, %p1076_p4 }
 0x36b   : > { %p925_p11 = por %p924_p10, %p923_p9 }
 0x36c   : > { %p921_p7 = pneg %p920_p6 }
 0x36d   : > { %p927_p13 = por %p926_p12, %p925_p11 }
 0x36f   : > { %p928_p0 = pnand %p927_p13, %p921_p7 }
 0x371   : > { %931 = shalt.err (!%p928_p0)
}
 0x372   : > { %792 = dma.vmem_to_hbm [thread:$0]  (%p1076_p4), %s1156_s30, 128, %s1154_s12, %s644_s16  }
 0x373 PF: > { %p798_p1 = scmp.ge.s32.totalorder %s984_s29, 2  ;;  %s670_s8 = sand.u32 1, %s964_s24  }
 0x374   : > { %s671_s10 = scalar_lea.sflag [#allocation6], %s670_s8 }
 0x375   : > { %p795_p2 = pnand %p798_p1, %p1083_p8 }
 0x377   : > { %959 = dma.done.wait (!%p795_p2), %s671_s10, 128  }
 0x378   : > { %961 = vsyncadd (!%p795_p2), %s671_s10, 4294967168  ;;  %s20_s29 = sadd.s32 1, %s984_s29   ;;  %s1217_s11 = sld [smem:[#allocation15_spill]] }
 0x379   : > { %p17_p3 = scmp.ge.s32.totalorder %s20_s29, 4   ;;  %s1218_s24 = smov %s968_s25 }
 0x37a   : > { %s1219_s25 = smov %s972_s26  ;;  %s1220_s26 = smov %s1089_s14 }
 0x37b   : > { %s1221_s27 = smov %s980_s28  ;;  %19 = sbr.rel (!%p17_p3) target bundleno = 4 (0x4), region = 105 }
 0x37e   : > { %s1222_s28 = smov %s1217_s11 }
 0x382   :  { %676 = vsyncpa [#allocation6], 1 }
 0x383   :  { %678 = vsyncpa [#allocation6 + $0x1], 1 }
 0x384   :  { %679 = vsyncmov [#allocation4] }
 0x387   :  { %s680_s13 = vpop.sfrf %679 }
 0x388   :  { %p760_p4 = scmp.ne.s32.totalorder %s680_s13, 0 }
 0x38a   :  { %684 = shalt.err (%p760_p4)  }
 0x38b   :  { %686 = vsyncmov [#allocation4 + $0x1] }
 0x38e   :  { %s687_s30 = vpop.sfrf %686 }
 0x38f   :  { %p761_p8 = scmp.ne.s32.totalorder %s687_s30, 0 }
 0x391   :  { %691 = shalt.err (%p761_p8)  }

</bundles_post_ra>
